<compile_context>
chip_gen: v6e
topology: v6e:2x2x1
jax: 0.10.0
libtpu: 0.0.40
codegen_flags: <defaults>
</compile_context>

<pallas_src>
import jax
import jax.numpy as jnp
from jax.experimental import pallas as pl
from jax.experimental.pallas import tpu as pltpu

JOB_FEATURES = 8          # global constant referenced by the original module
D_MODEL = 128
_SUBLANE = 16             # conservative sublane tile (bf16); also valid for f32


# ------------------------------ fused kernel -------------------------------

def actor_fwd_kernel(job_ref, run_ref, green_ref,
                     jw1_ref, jb1_ref, jw2_ref, jb2_ref,
                     rw1_ref, rb1_ref, rw2_ref, rb2_ref,
                     gw1_ref, gb1_ref, gw2_ref, gb2_ref,
                     job_o_ref, run_o_ref, green_o_ref):
    """Three (Linear -> ReLU -> Linear -> ReLU) encoders fused in one kernel.

    Inputs/weights are bf16 (MXU-native), biases f32, accumulation f32.
    The [rows, 64] hidden activations stay in registers/VMEM; only the
    lane-dense [rows, 128] bf16 encoder outputs are stored.
    """
    def mlp2(x, w1, b1, w2, b2, out_dtype):
        h = jnp.dot(x, w1, preferred_element_type=jnp.float32) + b1
        h = jnp.maximum(h, 0.0).astype(x.dtype)          # back to bf16 for MXU
        o = jnp.dot(h, w2, preferred_element_type=jnp.float32) + b2
        return jnp.maximum(o, 0.0).astype(out_dtype)

    job_o_ref[...] = mlp2(job_ref[...], jw1_ref[...], jb1_ref[...],
                          jw2_ref[...], jb2_ref[...], job_o_ref.dtype)
    run_o_ref[...] = mlp2(run_ref[...], rw1_ref[...], rb1_ref[...],
                          rw2_ref[...], rb2_ref[...], run_o_ref.dtype)
    green_o_ref[...] = mlp2(green_ref[...], gw1_ref[...], gb1_ref[...],
                            gw2_ref[...], gb2_ref[...], green_o_ref.dtype)


# -------------------------- parameter construction -------------------------

def init_linear(key, fan_in, fan_out):
    """PyTorch-default-style uniform(-1/sqrt(fan_in), +1/sqrt(fan_in)) init."""
    kw, kb = jax.random.split(key)
    bound = 1.0 / float(fan_in) ** 0.5
    w = jax.random.uniform(kw, (fan_in, fan_out), jnp.float32, -bound, bound)
    b = jax.random.uniform(kb, (1, fan_out), jnp.float32, -bound, bound)
    return w, b


def init_actor_params(key, featureNum1, featureNum2, featureNum3, d_model=D_MODEL):
    ks = jax.random.split(key, 6)
    return {
        "job":   (init_linear(ks[0], featureNum1, 64), init_linear(ks[1], 64, d_model)),
        "run":   (init_linear(ks[2], featureNum2, 64), init_linear(ks[3], 64, d_model)),
        "green": (init_linear(ks[4], featureNum3, 64), init_linear(ks[5], 64, d_model)),
    }


# ------------------------------ tiling helpers ------------------------------

def _pick_batch_tile(B, n1, n2, n3, target_rows=1024):
    """Largest-benefit legal batch tile.

    Prefers tb < B (so nb >= 2 grid steps: both v7x TensorCores get work) with
    tb*nX all multiples of the sublane tile and ~target_rows rows per encoder
    per step.  Falls back to tb = B (single step, full-array blocks -> always
    legal) when no smaller tile is legal (e.g. the tiny demo shapes).
    """
    best = None
    for tb in range(1, B):
        if B % tb:
            continue
        if (tb * n1) % _SUBLANE or (tb * n2) % _SUBLANE or (tb * n3) % _SUBLANE:
            continue
        rows = max(tb * n1, tb * n2, tb * n3)
        score = abs(rows - target_rows)
        if best is None or score < best[0]:
            best = (score, tb)
    return best[1] if best is not None else B


def _padded_block_bytes(shape, dtype):
    """VMEM bytes of one (2-D) block after (sublane, 128) lane padding."""
    item = jnp.dtype(dtype).itemsize
    sub = {1: 32, 2: 16, 4: 8}.get(item, 8)
    rows = -(-shape[0] // sub) * sub
    cols = -(-shape[1] // 128) * 128
    return rows * cols * item


# -------------------------------- forward ----------------------------------

def actor_forward(params, x, num_inputs1, featureNum1, num_inputs2, featureNum2,
                  num_inputs3, featureNum3, *, batch_tile=None,
                  compute_dtype=jnp.bfloat16, out_dtype=jnp.bfloat16):
    """ActorNet.forward: returns (job, run, green) encoder outputs."""
    B = x.shape[0]
    n1, n2, n3 = num_inputs1, num_inputs2, num_inputs3
    f1, f2, f3 = featureNum1, featureNum2, featureNum3
    ntot = n1 + n2 + n3

    # ---- batch tiling -------------------------------------------------------
    tb = _pick_batch_tile(B, n1, n2, n3) if batch_tile is None else batch_tile
    assert B % tb == 0, "batch_tile must divide the batch size"
    nb = B // tb
    if nb > 1:
        for rows in (tb * n1, tb * n2, tb * n3):
            assert rows % _SUBLANE == 0, (
                f"batch_tile={tb} gives a per-step row count {rows} that is not "
                f"a multiple of {_SUBLANE}; illegal block shape when nb > 1")

    # ---- slice tokens / features exactly like the PyTorch forward ----------
    # Flatten (B, n) into rows so each encoder is a plain 2-D MXU matmul, and
    # cast to bf16 (allow_input_fusion lets XLA fuse these producers into the
    # pallas_call operand DMAs instead of materializing extra HBM slabs).
    job = x[:, :n1, :f1].reshape(B * n1, f1).astype(compute_dtype)
    run = x[:, n1:n1 + n2, :f2].reshape(B * n2, f2).astype(compute_dtype)
    green = x[:, n1 + n2:ntot, :f3].reshape(B * n3, f3).astype(compute_dtype)

    (jw1, jb1), (jw2, jb2) = params["job"]
    (rw1, rb1), (rw2, rb2) = params["run"]
    (gw1, gb1), (gw2, gb2) = params["green"]
    # weights bf16 (MXU-native, halves resident-weight DMA); biases f32.
    weights = tuple(
        a.astype(compute_dtype) if i % 2 == 0 else a.astype(jnp.float32)
        for i, a in enumerate((jw1, jb1, jw2, jb2,
                               rw1, rb1, rw2, rb2,
                               gw1, gb1, gw2, gb2)))

    def tile_spec(rows, width):
        # Activation / output tiles walk the batch grid.
        return pl.BlockSpec((rows, width), lambda i: (i, 0))

    def resident_spec(a):
        # Weights/biases: same full block every step -> stay VMEM-resident.
        return pl.BlockSpec(a.shape, lambda i: (0, 0))

    in_specs = [tile_spec(tb * n1, f1),
                tile_spec(tb * n2, f2),
                tile_spec(tb * n3, f3)] + [resident_spec(a) for a in weights]
    out_specs = [tile_spec(tb * n1, D_MODEL),
                 tile_spec(tb * n2, D_MODEL),
                 tile_spec(tb * n3, D_MODEL)]
    out_shapes = (
        jax.ShapeDtypeStruct((B * n1, D_MODEL), out_dtype),
        jax.ShapeDtypeStruct((B * n2, D_MODEL), out_dtype),
        jax.ShapeDtypeStruct((B * n3, D_MODEL), out_dtype),
    )

    # ---- VMEM budget (double-buffered padded blocks + resident weights) ----
    est = 0
    for rows, width in ((tb * n1, f1), (tb * n2, f2), (tb * n3, f3)):
        est += _padded_block_bytes((rows, width), compute_dtype)
    for rows in (tb * n1, tb * n2, tb * n3):
        est += _padded_block_bytes((rows, D_MODEL), out_dtype)
    for a in weights:
        est += _padded_block_bytes(a.shape, a.dtype)
    vmem_limit = int(min(48 << 20, max(16 << 20, 2 * est + (2 << 20))))

    # ---- advisory cost hint for XLA scheduling of the surrounding glue -----
    flops = 2 * (B * n1 * (f1 * 64 + 64 * D_MODEL)
                 + B * n2 * (f2 * 64 + 64 * D_MODEL)
                 + B * n3 * (f3 * 64 + 64 * D_MODEL))
    in_bytes = sum(int(a.size) * jnp.dtype(a.dtype).itemsize
                   for a in (job, run, green) + weights)
    out_bytes = B * ntot * D_MODEL * jnp.dtype(out_dtype).itemsize
    bytes_accessed = int(in_bytes + out_bytes)

    grid_spec = pltpu.PrefetchScalarGridSpec(
        num_scalar_prefetch=0,
        grid=(nb,),
        in_specs=in_specs,
        out_specs=out_specs,
    )

    job_e, run_e, green_e = pl.pallas_call(
        actor_fwd_kernel,
        out_shape=out_shapes,
        grid_spec=grid_spec,
        compiler_params=pltpu.CompilerParams(
            dimension_semantics=("parallel",),
            vmem_limit_bytes=vmem_limit,
            # let XLA fuse the slice+reshape+convert producers of the three
            # activation operands into the pallas_call operand DMAs.
            allow_input_fusion=[True, True, True] + [False] * len(weights)),
        cost_estimate=pl.CostEstimate(
            flops=int(flops), transcendentals=0, bytes_accessed=bytes_accessed),
    )(job, run, green, *weights)

    return (job_e.reshape(B, n1, D_MODEL),
            run_e.reshape(B, n2, D_MODEL),
            green_e.reshape(B, n3, D_MODEL))


# --------------------------------- main -------------------------------------

if __name__ == "__main__":
    # small shapes consistent with the module
    B = 2
    num_inputs1, featureNum1 = 4, 8
    num_inputs2, featureNum2 = 3, 6
    num_inputs3, featureNum3 = 2, 4
    N = num_inputs1 + num_inputs2 + num_inputs3           # 9 tokens
    F = max(featureNum1, featureNum2, featureNum3, JOB_FEATURES)  # 8 features

    key = jax.random.PRNGKey(0)
    kx, kp = jax.random.split(key)
    x = jax.random.normal(kx, (B, N, F), dtype=jnp.float32)

    params = init_actor_params(kp, featureNum1, featureNum2, featureNum3)

    job_e, run_e, green_e = actor_forward(
        params, x, num_inputs1, featureNum1, num_inputs2, featureNum2,
        num_inputs3, featureNum3)
    jax.block_until_ready((job_e, run_e, green_e))

    assert job_e.shape == (B, num_inputs1, D_MODEL), job_e.shape
    assert run_e.shape == (B, num_inputs2, D_MODEL), run_e.shape
    assert green_e.shape == (B, num_inputs3, D_MODEL), green_e.shape
    assert job_e.dtype == jnp.bfloat16, job_e.dtype

    # pure-JAX reference mirroring the kernel's precision choices
    # (bf16 inputs/weights/hidden, f32 accumulation, bf16 output).
    def ref_mlp2(v, p, compute_dtype=jnp.bfloat16, out_dtype=jnp.bfloat16):
        (w1, b1), (w2, b2) = p
        v = v.astype(compute_dtype)
        h = jnp.dot(v, w1.astype(compute_dtype),
                    preferred_element_type=jnp.float32) + b1
        h = jnp.maximum(h, 0.0).astype(compute_dtype)
        o = jnp.dot(h, w2.astype(compute_dtype),
                    preferred_element_type=jnp.float32) + b2
        return jnp.maximum(o, 0.0).astype(out_dtype)

    ref_job = ref_mlp2(x[:, :num_inputs1, :featureNum1], params["job"])
    ref_run = ref_mlp2(x[:, num_inputs1:num_inputs1 + num_inputs2, :featureNum2],
                       params["run"])
    ref_green = ref_mlp2(x[:, num_inputs1 + num_inputs2:N, :featureNum3],
                         params["green"])

    for got, want in ((job_e, ref_job), (run_e, ref_run), (green_e, ref_green)):
        err = float(jnp.max(jnp.abs(got.astype(jnp.float32)
                                    - want.astype(jnp.float32))))
        assert err <= 2e-2, err

    print("KERNEL_OK")
</pallas_src>

<mosaic_0001>
module attributes {stable_mosaic.version = 11 : i64} {
  func.func @actor_fwd_kernel(%arg0: i32, %arg1: memref<8x8xbf16, #tpu.memory_space<vmem>>, %arg2: memref<6x6xbf16, #tpu.memory_space<vmem>>, %arg3: memref<4x4xbf16, #tpu.memory_space<vmem>>, %arg4: memref<8x64xbf16, #tpu.memory_space<vmem>>, %arg5: memref<1x64xf32, #tpu.memory_space<vmem>>, %arg6: memref<64x128xbf16, #tpu.memory_space<vmem>>, %arg7: memref<1x128xf32, #tpu.memory_space<vmem>>, %arg8: memref<6x64xbf16, #tpu.memory_space<vmem>>, %arg9: memref<1x64xf32, #tpu.memory_space<vmem>>, %arg10: memref<64x128xbf16, #tpu.memory_space<vmem>>, %arg11: memref<1x128xf32, #tpu.memory_space<vmem>>, %arg12: memref<4x64xbf16, #tpu.memory_space<vmem>>, %arg13: memref<1x64xf32, #tpu.memory_space<vmem>>, %arg14: memref<64x128xbf16, #tpu.memory_space<vmem>>, %arg15: memref<1x128xf32, #tpu.memory_space<vmem>>, %arg16: memref<8x128xbf16, #tpu.memory_space<vmem>>, %arg17: memref<6x128xbf16, #tpu.memory_space<vmem>>, %arg18: memref<4x128xbf16, #tpu.memory_space<vmem>>) attributes {dimension_semantics = [#tpu.dimension_semantics<parallel>], iteration_bounds = array<i64: 1>, scalar_prefetch = 0 : i64, scratch_operands = 0 : i64, tpu.core_type = #tpu.core_type<tc>, window_params = [{transform_indices = @transform_0, window_bounds = array<i64: 8, 8>}, {transform_indices = @transform_1, window_bounds = array<i64: 6, 6>}, {transform_indices = @transform_2, window_bounds = array<i64: 4, 4>}, {pipeline_mode = #tpu.pipeline_mode<synchronous>, transform_indices = @transform_3, window_bounds = array<i64: 8, 64>}, {pipeline_mode = #tpu.pipeline_mode<synchronous>, transform_indices = @transform_4, window_bounds = array<i64: 1, 64>}, {pipeline_mode = #tpu.pipeline_mode<synchronous>, transform_indices = @transform_5, window_bounds = array<i64: 64, 128>}, {pipeline_mode = #tpu.pipeline_mode<synchronous>, transform_indices = @transform_6, window_bounds = array<i64: 1, 128>}, {pipeline_mode = #tpu.pipeline_mode<synchronous>, transform_indices = @transform_7, window_bounds = array<i64: 6, 64>}, {pipeline_mode = #tpu.pipeline_mode<synchronous>, transform_indices = @transform_8, window_bounds = array<i64: 1, 64>}, {pipeline_mode = #tpu.pipeline_mode<synchronous>, transform_indices = @transform_9, window_bounds = array<i64: 64, 128>}, {pipeline_mode = #tpu.pipeline_mode<synchronous>, transform_indices = @transform_10, window_bounds = array<i64: 1, 128>}, {pipeline_mode = #tpu.pipeline_mode<synchronous>, transform_indices = @transform_11, window_bounds = array<i64: 4, 64>}, {pipeline_mode = #tpu.pipeline_mode<synchronous>, transform_indices = @transform_12, window_bounds = array<i64: 1, 64>}, {pipeline_mode = #tpu.pipeline_mode<synchronous>, transform_indices = @transform_13, window_bounds = array<i64: 64, 128>}, {pipeline_mode = #tpu.pipeline_mode<synchronous>, transform_indices = @transform_14, window_bounds = array<i64: 1, 128>}, {transform_indices = @transform_15, window_bounds = array<i64: 8, 128>}, {transform_indices = @transform_16, window_bounds = array<i64: 6, 128>}, {transform_indices = @transform_17, window_bounds = array<i64: 4, 128>}]} {
    %c0 = arith.constant 0 : index
    %c0_0 = arith.constant 0 : index
    %0 = vector.load %arg1[%c0, %c0_0] : memref<8x8xbf16, #tpu.memory_space<vmem>>, vector<8x8xbf16>
    %c0_1 = arith.constant 0 : index
    %c0_2 = arith.constant 0 : index
    %1 = vector.load %arg4[%c0_1, %c0_2] : memref<8x64xbf16, #tpu.memory_space<vmem>>, vector<8x64xbf16>
    %c0_3 = arith.constant 0 : index
    %c0_4 = arith.constant 0 : index
    %2 = vector.load %arg5[%c0_3, %c0_4] : memref<1x64xf32, #tpu.memory_space<vmem>>, vector<1x64xf32>
    %c0_5 = arith.constant 0 : index
    %c0_6 = arith.constant 0 : index
    %3 = vector.load %arg6[%c0_5, %c0_6] : memref<64x128xbf16, #tpu.memory_space<vmem>>, vector<64x128xbf16>
    %c0_7 = arith.constant 0 : index
    %c0_8 = arith.constant 0 : index
    %4 = vector.load %arg7[%c0_7, %c0_8] : memref<1x128xf32, #tpu.memory_space<vmem>>, vector<1x128xf32>
    %cst = arith.constant dense<0.000000e+00> : vector<8x64xf32>
    %5 = tpu.matmul %0, %1, %cst {dimension_numbers = #tpu.dot_dimension_numbers<[1], [0], [0], [1], [0, 0, 1, 1], [], []>} : vector<8x8xbf16>, vector<8x64xbf16>, vector<8x64xf32> -> vector<8x64xf32>
    %6 = vector.broadcast %2 : vector<1x64xf32> to vector<8x64xf32>
    %7 = arith.addf %5, %6 : vector<8x64xf32>
    %cst_9 = arith.constant 0.000000e+00 : f32
    %8 = vector.broadcast %cst_9 : f32 to vector<8x64xf32>
    %9 = arith.maximumf %7, %8 : vector<8x64xf32>
    %10 = arith.truncf %9 : vector<8x64xf32> to vector<8x64xbf16>
    %cst_10 = arith.constant dense<0.000000e+00> : vector<8x128xf32>
    %11 = tpu.matmul %10, %3, %cst_10 {dimension_numbers = #tpu.dot_dimension_numbers<[1], [0], [0], [1], [0, 0, 1, 1], [], []>} : vector<8x64xbf16>, vector<64x128xbf16>, vector<8x128xf32> -> vector<8x128xf32>
    %12 = vector.broadcast %4 : vector<1x128xf32> to vector<8x128xf32>
    %13 = arith.addf %11, %12 : vector<8x128xf32>
    %cst_11 = arith.constant 0.000000e+00 : f32
    %14 = vector.broadcast %cst_11 : f32 to vector<8x128xf32>
    %15 = arith.maximumf %13, %14 : vector<8x128xf32>
    %16 = arith.truncf %15 : vector<8x128xf32> to vector<8x128xbf16>
    %c0_12 = arith.constant 0 : index
    %c0_13 = arith.constant 0 : index
    %17 = vector.load %arg16[%c0_12, %c0_13] : memref<8x128xbf16, #tpu.memory_space<vmem>>, vector<8x128xbf16>
    tpu.vector_store %arg16[%c0_12, %c0_13], %16 {strides = array<i32>} : memref<8x128xbf16, #tpu.memory_space<vmem>>, vector<8x128xbf16>,
    %c0_14 = arith.constant 0 : index
    %c0_15 = arith.constant 0 : index
    %18 = vector.load %arg2[%c0_14, %c0_15] : memref<6x6xbf16, #tpu.memory_space<vmem>>, vector<6x6xbf16>
    %c0_16 = arith.constant 0 : index
    %c0_17 = arith.constant 0 : index
    %19 = vector.load %arg8[%c0_16, %c0_17] : memref<6x64xbf16, #tpu.memory_space<vmem>>, vector<6x64xbf16>
    %c0_18 = arith.constant 0 : index
    %c0_19 = arith.constant 0 : index
    %20 = vector.load %arg9[%c0_18, %c0_19] : memref<1x64xf32, #tpu.memory_space<vmem>>, vector<1x64xf32>
    %c0_20 = arith.constant 0 : index
    %c0_21 = arith.constant 0 : index
    %21 = vector.load %arg10[%c0_20, %c0_21] : memref<64x128xbf16, #tpu.memory_space<vmem>>, vector<64x128xbf16>
    %c0_22 = arith.constant 0 : index
    %c0_23 = arith.constant 0 : index
    %22 = vector.load %arg11[%c0_22, %c0_23] : memref<1x128xf32, #tpu.memory_space<vmem>>, vector<1x128xf32>
    %cst_24 = arith.constant dense<0.000000e+00> : vector<6x64xf32>
    %23 = tpu.matmul %18, %19, %cst_24 {dimension_numbers = #tpu.dot_dimension_numbers<[1], [0], [0], [1], [0, 0, 1, 1], [], []>} : vector<6x6xbf16>, vector<6x64xbf16>, vector<6x64xf32> -> vector<6x64xf32>
    %24 = vector.broadcast %20 : vector<1x64xf32> to vector<6x64xf32>
    %25 = arith.addf %23, %24 : vector<6x64xf32>
    %cst_25 = arith.constant 0.000000e+00 : f32
    %26 = vector.broadcast %cst_25 : f32 to vector<6x64xf32>
    %27 = arith.maximumf %25, %26 : vector<6x64xf32>
    %28 = arith.truncf %27 : vector<6x64xf32> to vector<6x64xbf16>
    %cst_26 = arith.constant dense<0.000000e+00> : vector<6x128xf32>
    %29 = tpu.matmul %28, %21, %cst_26 {dimension_numbers = #tpu.dot_dimension_numbers<[1], [0], [0], [1], [0, 0, 1, 1], [], []>} : vector<6x64xbf16>, vector<64x128xbf16>, vector<6x128xf32> -> vector<6x128xf32>
    %30 = vector.broadcast %22 : vector<1x128xf32> to vector<6x128xf32>
    %31 = arith.addf %29, %30 : vector<6x128xf32>
    %cst_27 = arith.constant 0.000000e+00 : f32
    %32 = vector.broadcast %cst_27 : f32 to vector<6x128xf32>
    %33 = arith.maximumf %31, %32 : vector<6x128xf32>
    %34 = arith.truncf %33 : vector<6x128xf32> to vector<6x128xbf16>
    %c0_28 = arith.constant 0 : index
    %c0_29 = arith.constant 0 : index
    %35 = vector.load %arg17[%c0_28, %c0_29] : memref<6x128xbf16, #tpu.memory_space<vmem>>, vector<6x128xbf16>
    tpu.vector_store %arg17[%c0_28, %c0_29], %34 {strides = array<i32>} : memref<6x128xbf16, #tpu.memory_space<vmem>>, vector<6x128xbf16>,
    %c0_30 = arith.constant 0 : index
    %c0_31 = arith.constant 0 : index
    %36 = vector.load %arg3[%c0_30, %c0_31] : memref<4x4xbf16, #tpu.memory_space<vmem>>, vector<4x4xbf16>
    %c0_32 = arith.constant 0 : index
    %c0_33 = arith.constant 0 : index
    %37 = vector.load %arg12[%c0_32, %c0_33] : memref<4x64xbf16, #tpu.memory_space<vmem>>, vector<4x64xbf16>
    %c0_34 = arith.constant 0 : index
    %c0_35 = arith.constant 0 : index
    %38 = vector.load %arg13[%c0_34, %c0_35] : memref<1x64xf32, #tpu.memory_space<vmem>>, vector<1x64xf32>
    %c0_36 = arith.constant 0 : index
    %c0_37 = arith.constant 0 : index
    %39 = vector.load %arg14[%c0_36, %c0_37] : memref<64x128xbf16, #tpu.memory_space<vmem>>, vector<64x128xbf16>
    %c0_38 = arith.constant 0 : index
    %c0_39 = arith.constant 0 : index
    %40 = vector.load %arg15[%c0_38, %c0_39] : memref<1x128xf32, #tpu.memory_space<vmem>>, vector<1x128xf32>
    %cst_40 = arith.constant dense<0.000000e+00> : vector<4x64xf32>
    %41 = tpu.matmul %36, %37, %cst_40 {dimension_numbers = #tpu.dot_dimension_numbers<[1], [0], [0], [1], [0, 0, 1, 1], [], []>} : vector<4x4xbf16>, vector<4x64xbf16>, vector<4x64xf32> -> vector<4x64xf32>
    %42 = vector.broadcast %38 : vector<1x64xf32> to vector<4x64xf32>
    %43 = arith.addf %41, %42 : vector<4x64xf32>
    %cst_41 = arith.constant 0.000000e+00 : f32
    %44 = vector.broadcast %cst_41 : f32 to vector<4x64xf32>
    %45 = arith.maximumf %43, %44 : vector<4x64xf32>
    %46 = arith.truncf %45 : vector<4x64xf32> to vector<4x64xbf16>
    %cst_42 = arith.constant dense<0.000000e+00> : vector<4x128xf32>
    %47 = tpu.matmul %46, %39, %cst_42 {dimension_numbers = #tpu.dot_dimension_numbers<[1], [0], [0], [1], [0, 0, 1, 1], [], []>} : vector<4x64xbf16>, vector<64x128xbf16>, vector<4x128xf32> -> vector<4x128xf32>
    %48 = vector.broadcast %40 : vector<1x128xf32> to vector<4x128xf32>
    %49 = arith.addf %47, %48 : vector<4x128xf32>
    %cst_43 = arith.constant 0.000000e+00 : f32
    %50 = vector.broadcast %cst_43 : f32 to vector<4x128xf32>
    %51 = arith.maximumf %49, %50 : vector<4x128xf32>
    %52 = arith.truncf %51 : vector<4x128xf32> to vector<4x128xbf16>
    %c0_44 = arith.constant 0 : index
    %c0_45 = arith.constant 0 : index
    %53 = vector.load %arg18[%c0_44, %c0_45] : memref<4x128xbf16, #tpu.memory_space<vmem>>, vector<4x128xbf16>
    tpu.vector_store %arg18[%c0_44, %c0_45], %52 {strides = array<i32>} : memref<4x128xbf16, #tpu.memory_space<vmem>>, vector<4x128xbf16>,
    return
  }
  func.func @transform_0(%arg0: i32) -> (i32, i32) {
    %c0_i32 = arith.constant 0 : i32
    %c0_i32_0 = arith.constant 0 : i32
    return %arg0, %c0_i32 : i32, i32
  }
  func.func @transform_1(%arg0: i32) -> (i32, i32) {
    %c0_i32 = arith.constant 0 : i32
    %c0_i32_0 = arith.constant 0 : i32
    return %arg0, %c0_i32 : i32, i32
  }
  func.func @transform_2(%arg0: i32) -> (i32, i32) {
    %c0_i32 = arith.constant 0 : i32
    %c0_i32_0 = arith.constant 0 : i32
    return %arg0, %c0_i32 : i32, i32
  }
  func.func @transform_3(%arg0: i32) -> (i32, i32) {
    %c0_i32 = arith.constant 0 : i32
    %c0_i32_0 = arith.constant 0 : i32
    %c0_i32_1 = arith.constant 0 : i32
    return %c0_i32, %c0_i32_0 : i32, i32
  }
  func.func @transform_4(%arg0: i32) -> (i32, i32) {
    %c0_i32 = arith.constant 0 : i32
    %c0_i32_0 = arith.constant 0 : i32
    %c0_i32_1 = arith.constant 0 : i32
    return %c0_i32, %c0_i32_0 : i32, i32
  }
  func.func @transform_5(%arg0: i32) -> (i32, i32) {
    %c0_i32 = arith.constant 0 : i32
    %c0_i32_0 = arith.constant 0 : i32
    %c0_i32_1 = arith.constant 0 : i32
    return %c0_i32, %c0_i32_0 : i32, i32
  }
  func.func @transform_6(%arg0: i32) -> (i32, i32) {
    %c0_i32 = arith.constant 0 : i32
    %c0_i32_0 = arith.constant 0 : i32
    %c0_i32_1 = arith.constant 0 : i32
    return %c0_i32, %c0_i32_0 : i32, i32
  }
  func.func @transform_7(%arg0: i32) -> (i32, i32) {
    %c0_i32 = arith.constant 0 : i32
    %c0_i32_0 = arith.constant 0 : i32
    %c0_i32_1 = arith.constant 0 : i32
    return %c0_i32, %c0_i32_0 : i32, i32
  }
  func.func @transform_8(%arg0: i32) -> (i32, i32) {
    %c0_i32 = arith.constant 0 : i32
    %c0_i32_0 = arith.constant 0 : i32
    %c0_i32_1 = arith.constant 0 : i32
    return %c0_i32, %c0_i32_0 : i32, i32
  }
  func.func @transform_9(%arg0: i32) -> (i32, i32) {
    %c0_i32 = arith.constant 0 : i32
    %c0_i32_0 = arith.constant 0 : i32
    %c0_i32_1 = arith.constant 0 : i32
    return %c0_i32, %c0_i32_0 : i32, i32
  }
  func.func @transform_10(%arg0: i32) -> (i32, i32) {
    %c0_i32 = arith.constant 0 : i32
    %c0_i32_0 = arith.constant 0 : i32
    %c0_i32_1 = arith.constant 0 : i32
    return %c0_i32, %c0_i32_0 : i32, i32
  }
  func.func @transform_11(%arg0: i32) -> (i32, i32) {
    %c0_i32 = arith.constant 0 : i32
    %c0_i32_0 = arith.constant 0 : i32
    %c0_i32_1 = arith.constant 0 : i32
    return %c0_i32, %c0_i32_0 : i32, i32
  }
  func.func @transform_12(%arg0: i32) -> (i32, i32) {
    %c0_i32 = arith.constant 0 : i32
    %c0_i32_0 = arith.constant 0 : i32
    %c0_i32_1 = arith.constant 0 : i32
    return %c0_i32, %c0_i32_0 : i32, i32
  }
  func.func @transform_13(%arg0: i32) -> (i32, i32) {
    %c0_i32 = arith.constant 0 : i32
    %c0_i32_0 = arith.constant 0 : i32
    %c0_i32_1 = arith.constant 0 : i32
    return %c0_i32, %c0_i32_0 : i32, i32
  }
  func.func @transform_14(%arg0: i32) -> (i32, i32) {
    %c0_i32 = arith.constant 0 : i32
    %c0_i32_0 = arith.constant 0 : i32
    %c0_i32_1 = arith.constant 0 : i32
    return %c0_i32, %c0_i32_0 : i32, i32
  }
  func.func @transform_15(%arg0: i32) -> (i32, i32) {
    %c0_i32 = arith.constant 0 : i32
    %c0_i32_0 = arith.constant 0 : i32
    return %arg0, %c0_i32 : i32, i32
  }
  func.func @transform_16(%arg0: i32) -> (i32, i32) {
    %c0_i32 = arith.constant 0 : i32
    %c0_i32_0 = arith.constant 0 : i32
    return %arg0, %c0_i32 : i32, i32
  }
  func.func @transform_17(%arg0: i32) -> (i32, i32) {
    %c0_i32 = arith.constant 0 : i32
    %c0_i32_0 = arith.constant 0 : i32
    return %arg0, %c0_i32 : i32, i32
  }
}

</mosaic_0001>

<bundles_post_ra>
// kernel: tpu_custom_call.1
= control target key start
LH: loop header
LB: loop body
LE: loop exit
PB: predicated region body
PF: predicated region fallthrough
CT: control target
= control target key end

     0   :  { %s1183_s0 = inlined_call_operand.hbm [shape: bf16[8,8], index: 0, kind: input, shape index: {}]   ;;  %s1184_s1 = inlined_call_operand.hbm [shape: bf16[6,6], index: 1, kind: input, shape index: {}]   ;;  %s1185_s2 = inlined_call_operand.hbm [shape: bf16[4,4], index: 2, kind: input, shape index: {}]   ;;  %s1186_s3 = inlined_call_operand.vmem [shape: bf16[8,64], index: 3, kind: input, shape index: {}]   ;;  %s1187_s4 = inlined_call_operand.hbm [shape: f32[1,64], index: 4, kind: input, shape index: {}]   ;;  %s1188_s5 = inlined_call_operand.hbm [shape: bf16[64,128], index: 5, kind: input, shape index: {}]   ;;  %s1189_s6 = inlined_call_operand.hbm [shape: f32[1,128], index: 6, kind: input, shape index: {}]   ;;  %s1190_s7 = inlined_call_operand.vmem [shape: bf16[6,64], index: 7, kind: input, shape index: {}]   ;;  %s1191_s8 = inlined_call_operand.vmem [shape: f32[1,64], index: 8, kind: input, shape index: {}]   ;;  %s1192_s9 = inlined_call_operand.hbm [shape: bf16[64,128], index: 9, kind: input, shape index: {}]   ;;  %s1193_s10 = inlined_call_operand.vmem [shape: f32[1,128], index: 10, kind: input, shape index: {}]   ;;  %s1194_s11 = inlined_call_operand.vmem [shape: bf16[4,64], index: 11, kind: input, shape index: {}]   ;;  %s1195_s12 = inlined_call_operand.vmem [shape: f32[1,64], index: 12, kind: input, shape index: {}]   ;;  %s1196_s13 = inlined_call_operand.hbm [shape: bf16[64,128], index: 13, kind: input, shape index: {}]   ;;  %s1197_s14 = inlined_call_operand.vmem [shape: f32[1,128], index: 14, kind: input, shape index: {}]   ;;  %s1198_s15 = inlined_call_operand.hbm [shape: bf16[8,128], index: 15, kind: output, shape index: {0}]   ;;  %s1199_s16 = inlined_call_operand.hbm [shape: bf16[6,128], index: 16, kind: output, shape index: {1}]   ;;  %s1200_s17 = inlined_call_operand.hbm [shape: bf16[4,128], index: 17, kind: output, shape index: {2}]  }
   0x1   :  { %1201 = sst [smem:[#allocation27_spill]] %s1183_s0 }
   0x2   :  { %1202 = sst [smem:[#allocation28_spill]] %s1184_s1 }
   0x3   :  { %23 = vsyncpa [#allocation3], 0 }
   0x4   :  { %24 = vsyncpa [#allocation6], 0 }
   0x5   :  { %25 = vsyncpa [#allocation9], 0 }
   0x6   :  { %26 = vsyncpa [#allocation12], 0 }
   0x7   :  { %27 = vsyncpa [#allocation15], 0 }
   0x8   :  { %28 = vsyncpa [#allocation4], 0 }
   0x9   :  { %29 = vsyncpa [#allocation18], 0  ;;  %s994_s24 = smov [#allocation5]   ;;  %s995_s26 = smov [#allocation8]  }
   0xa   :  { %s46_s25 = sshll.u32 %s994_s24, 4  ;;  %s68_s27 = sshll.u32 %s995_s26, 4  ;;  %s47_s25 = int_to_ptr.vmem [resolvable:$true] %s46_s25  ;;  %s69_s27 = int_to_ptr.vmem [resolvable:$true] %s68_s27 }
   0xb   :  { %s768_s28 = scalar_lea.vmem %s47_s25, 64  ;;  %p773_p1 = scmp.lt.s32.totalorder %s47_s25, %s47_s25 }
   0xc   :  { %p769_p0 = scmp.ne.s32.totalorder %s47_s25, %s768_s28  ;;  %p774_p2 = scmp.lt.s32.totalorder %s768_s28, %s768_s28 }
   0xe   :  { %p775_p3 = por %p774_p2, %p773_p1 }
  0x10   :  { %p776_p4 = pnand %p775_p3, %p769_p0 }
  0x12   :  { %779 = shalt.err (!%p776_p4)
}
  0x13   :  { %s1203_s30 = sld [smem:[#allocation28_spill]]  ;;  %s788_s18 = scalar_lea.vmem %s69_s27, 16 }
  0x14   :  { %p789_p5 = scmp.ne.s32.totalorder %s69_s27, %s788_s18  ;;  %s792_s19 = scalar_lea.vmem %s69_s27, 32 }
  0x15   :  { %p793_p6 = scmp.lt.s32.totalorder %s69_s27, %s69_s27  ;;  %p794_p7 = scmp.lt.s32.totalorder %s792_s19, %s788_s18 }
  0x17   :  { %p795_p8 = por %p794_p7, %p793_p6 }
  0x19   :  { %49 = dma.hbm_to_vmem [thread:$0]  %s1203_s30, 64, %s47_s25, [#allocation6]  }
  0x1a   :  { %p796_p9 = pnand %p795_p8, %p789_p5 }
  0x1c   :  { %799 = shalt.err (!%p796_p9)
}
  0x1d   :  { %71 = dma.hbm_to_vmem [thread:$0]  %s1187_s4, 16, %s69_s27, [#allocation9]  }
  0x1e   :  { %s996_s21 = smov [#allocation11]   ;;  %s997_s23 = smov [#allocation2]  }
  0x1f   :  { %s90_s22 = sshll.u32 %s996_s21, 4  ;;  %s36_s24 = sshll.u32 %s997_s23, 4  ;;  %s91_s22 = int_to_ptr.vmem [resolvable:$true] %s90_s22  ;;  %s37_s24 = int_to_ptr.vmem [resolvable:$true] %s36_s24 }
  0x20   :  { %s808_s26 = scalar_lea.vmem %s91_s22, 16  ;;  %s812_s25 = scalar_lea.vmem %s91_s22, 32 }
  0x21   :  { %p809_p10 = scmp.ne.s32.totalorder %s91_s22, %s808_s26  ;;  %p813_p11 = scmp.lt.s32.totalorder %s91_s22, %s91_s22 }
  0x22   :  { %p814_p12 = scmp.lt.s32.totalorder %s812_s25, %s808_s26 }
  0x24   :  { %p815_p13 = por %p814_p12, %p813_p11 }
  0x26   :  { %p816_p0 = pnand %p815_p13, %p809_p10 }
  0x28   :  { %819 = shalt.err (!%p816_p0)
}
  0x29   :  { %93 = dma.hbm_to_vmem [thread:$0]  %s1189_s6, 16, %s91_s22, [#allocation12]  }
  0x2a   :  { %s828_s0 = scalar_lea.vmem %s37_s24, 64  ;;  %p833_p2 = scmp.lt.s32.totalorder %s37_s24, %s37_s24 }
  0x2b   :  { %p829_p1 = scmp.ne.s32.totalorder %s37_s24, %s828_s0  ;;  %p834_p3 = scmp.lt.s32.totalorder %s828_s0, %s828_s0 }
  0x2d   :  { %p835_p4 = por %p834_p3, %p833_p2 }
  0x2f   :  { %p836_p5 = pnand %p835_p4, %p829_p1 }
  0x31   :  { %839 = shalt.err (!%p836_p5)
}
  0x32   :  { %s1204_s30 = sld [smem:[#allocation27_spill]]  ;;  %s998_s18 = smov [#allocation7]  }
  0x33   :  { %s56_s19 = sshll.u32 %s998_s18, 4  ;;  %s999_s1 = smov [#allocation10]   ;;  %s57_s19 = int_to_ptr.vmem [resolvable:$true] %s56_s19 }
  0x34   :  { %s77_s20 = sshll.u32 %s999_s1, 4  ;;  %s848_s21 = scalar_lea.vmem %s57_s19, 32  ;;  %s78_s20 = int_to_ptr.vmem [resolvable:$true] %s77_s20 }
  0x35   :  { %p849_p6 = scmp.ne.s32.totalorder %s57_s19, %s848_s21  ;;  %p853_p7 = scmp.lt.s32.totalorder %s57_s19, %s57_s19 }
  0x36   :  { %p854_p8 = scmp.lt.s32.totalorder %s848_s21, %s848_s21 }
  0x38   :  { %39 = dma.hbm_to_vmem [thread:$0]  %s1204_s30, 64, %s37_s24, [#allocation3]  }
  0x39   :  { %p855_p9 = por %p854_p8, %p853_p7 }
  0x3b   :  { %p856_p10 = pnand %p855_p9, %p849_p6 }
  0x3d   :  { %859 = shalt.err (!%p856_p10)
}
  0x3e   :  { %59 = dma.hbm_to_vmem [thread:$0]  %s1185_s2, 32, %s57_s19, [#allocation6]  }
  0x3f   :  { %s868_s23 = scalar_lea.vmem %s78_s20, 512  ;;  %p873_p12 = scmp.lt.s32.totalorder %s78_s20, %s78_s20 }
  0x40   :  { %p869_p11 = scmp.ne.s32.totalorder %s78_s20, %s868_s23  ;;  %p874_p13 = scmp.lt.s32.totalorder %s868_s23, %s868_s23 }
  0x42   :  { %p875_p0 = por %p874_p13, %p873_p12 }
  0x44   :  { %p876_p1 = pnand %p875_p0, %p869_p11 }
  0x46   :  { %879 = shalt.err (!%p876_p1)
}
  0x47   :  { %s1000_s24 = smov 64   ;;  %s1001_s26 = smov 4  }
  0x48   :  { %83 = dma.hbm_to_vmem [thread:$0]  %s1188_s5, 512, %s78_s20, [#allocation9], %s1000_s24, %s1000_s24, %s1001_s26  }
  0x49   :  { %s1002_s29 = smov [#allocation13]   ;;  %s1003_s4 = smov [#allocation14]  }
  0x4a   :  { %s103_s0 = sshll.u32 %s1002_s29, 4  ;;  %s121_s27 = sshll.u32 %s1003_s4, 4  ;;  %s104_s0 = int_to_ptr.vmem [resolvable:$true] %s103_s0  ;;  %s122_s27 = int_to_ptr.vmem [resolvable:$true] %s121_s27 }
  0x4b   :  { %s888_s2 = scalar_lea.vmem %s104_s0, 512  ;;  %p893_p3 = scmp.lt.s32.totalorder %s104_s0, %s104_s0 }
  0x4c   :  { %p889_p2 = scmp.ne.s32.totalorder %s104_s0, %s888_s2  ;;  %p894_p4 = scmp.lt.s32.totalorder %s888_s2, %s888_s2 }
  0x4e   :  { %p895_p5 = por %p894_p4, %p893_p3 }
  0x50   :  { %p896_p6 = pnand %p895_p5, %p889_p2 }
  0x52   :  { %899 = shalt.err (!%p896_p6)
}
  0x53   :  { %109 = dma.hbm_to_vmem [thread:$0]  %s1192_s9, 512, %s104_s0, [#allocation12], %s1000_s24, %s1000_s24, %s1001_s26  }
  0x54   :  { %s908_s19 = scalar_lea.vmem %s122_s27, 512  ;;  %p913_p8 = scmp.lt.s32.totalorder %s122_s27, %s122_s27 }
  0x55   :  { %p909_p7 = scmp.ne.s32.totalorder %s122_s27, %s908_s19  ;;  %p914_p9 = scmp.lt.s32.totalorder %s908_s19, %s908_s19 }
  0x57   :  { %p915_p10 = por %p914_p9, %p913_p8 }
  0x59   :  { %p916_p11 = pnand %p915_p10, %p909_p7 }
  0x5b   :  { %919 = shalt.err (!%p916_p11)
}
  0x5c   :  { %127 = dma.hbm_to_vmem [thread:$0]  %s1196_s13, 512, %s122_s27, [#allocation15], %s1000_s24, %s1000_s24, %s1001_s26  }
  0x5d   :  { %980 = dma.done.wait [#allocation3], 64  }
  0x5e   :  { %981 = vsyncadd [#allocation3], 4294967232 }
  0x5f   :  { %982 = dma.done.wait [#allocation6], 96  }
  0x60   :  { %983 = vsyncadd [#allocation6], 4294967200 }
  0x61   :  { %984 = dma.done.wait [#allocation9], 528  }
  0x62   :  { %985 = vsyncadd [#allocation9], 4294966768 }
  0x63   :  { %986 = dma.done.wait [#allocation12], 528  }
  0x64   :  { %987 = vsyncadd [#allocation12], 4294966768 }
  0x65   :  { %988 = dma.done.wait [#allocation15], 512  }
  0x66   :  { %989 = vsyncadd [#allocation15], 4294966784  ;;  %v1004_v0 = vmov 0.0   ;;  %vm1005_vm0 = vmmov 0   ;;  %vm177_vm1 = vcmask 1043456   ;;  %vm322_vm2 = vcmask 1042432  }
  0x67   :  { %679 = vmatprep.subr.bf16.mxu0 %v1004_v0  ;;  %681 = vmatprep.mubr.msk.bf16.mxu0 %vm1005_vm0, %v1004_v0  ;;  %v156_v1 = vld [vmem:[%s1186_s3] sm:$0xf]  ;;  %vm173_vm3 = vcmask 64512   ;;  %v748_v5 = vld [vmem:[#allocation10 + $0x18] sm:$0xff]   ;;  %vm318_vm4 = vcmask 48128   ;;  %v750_v9 = vld [vmem:[#allocation10 + $0x8] sm:$0xff]  }
  0x68   :  { %685 = vmatprep.subr.bf16.mxu1 %v1004_v0  ;;  %693 = vmatprep.mubr.msk.bf16.mxu1 %vm1005_vm0, %v1004_v0  ;;  %v301_v2 = vld [vmem:[%s1190_s7] sm:$0x7]  ;;  %v179_v3 = vsel %vm177_vm1, %v156_v1, 0  ;;  %v300_v8 = vld [vmem:[#allocation5] sm:$0x7]  ;;  %v752_v11 = vld [vmem:[#allocation10] sm:$0xff]  }
  0x69   :  { %v155_v4 = vld [vmem:[#allocation2] sm:$0xf]  ;;  %680 = vmatpush3.bf16.msra.mxu0 %v179_v3  ;;  %v324_v6 = vsel %vm322_vm2, %v301_v2, 0  ;;  %686 = vmatpush3.bf16.msra.mxu1 %v748_v5  ;;  %v751_v10 = vld [vmem:[#allocation13 + $0x18] sm:$0xff]   ;;  %v754_v13 = vld [vmem:[#allocation13 + $0x8] sm:$0xff]   ;;  %vm253_vm5 = vcmask 523264  }
  0x6a   :  { %697 = vmatprep.subr.bf16.mxu0 %v1004_v0  ;;  %v749_v7 = vld [vmem:[#allocation10 + $0x10] sm:$0xff]   ;;  %687 = vmatprep.subr.bf16.mxu1 %v1004_v0  ;;  %v755_v14 = vld [vmem:[#allocation13] sm:$0xff]   ;;  %v634_v15 = vld [vmem:[#allocation8] ss:$0 sm:$0xff]  ;;  %vm466_vm6 = vcmask 1041408   ;;  %vm462_vm7 = vcmask 31744  }
  0x6b   :  { %v753_v12 = vld [vmem:[#allocation13 + $0x10] sm:$0xff]   ;;  %v444_v33 = vld [vmem:[#allocation7] sm:$0x3]  ;;  %v758_v36 = vld [vmem:[#allocation14 + $0x8] sm:$0xff]   ;;  %s1007_s25 = smov [#allocation16]  }
  0x6c   :  { %682 = vmatmul.mubr.msk.bf16.vlgmr.msra.gmra.mxu0 %vm173_vm3, %v155_v4  ;;  %v642_v23 = vld [vmem:[%s1191_s8] ss:$0 sm:$0xff]  ;;  %v756_v34 = vld [vmem:[#allocation14 + $0x18] sm:$0xff]   ;;  %v759_v37 = vld [vmem:[#allocation14] sm:$0xff]   ;;  %s594_s28 = sshll.u32 %s1007_s25, 4  ;;  %s595_s28 = int_to_ptr.vmem [resolvable:$true] %s594_s28 }
  0x6d   :  { %698 = vmatpush3.bf16.msra.mxu0 %v324_v6  ;;  %699 = vmatprep.mubr.msk.bf16.mxu0 %vm1005_vm0, %v1004_v0  ;;  %v445_v27 = vld [vmem:[%s1194_s11] sm:$0x3]  ;;  %v636_v38 = vld [vmem:[#allocation11] ss:$0 sm:$0xff] }
  0x6e   :  { %703 = vmatprep.subr.bf16.mxu0 %v1004_v0  ;;  %688 = vmatpush3.bf16.msra.mxu1 %v749_v7  ;;  %v468_v31 = vsel %vm466_vm6, %v445_v27, 0  ;;  %v757_v35 = vld [vmem:[#allocation14 + $0x10] sm:$0xff]  }
  0x6f   :  { %689 = vmatprep.subr.bf16.mxu1 %v1004_v0  ;;  %v644_v46 = vld [vmem:[%s1193_s10] ss:$0 sm:$0xff]  ;;  %s1006_s10 = smov [#allocation17]  }
  0x70   :  { %v650_v54 = vld [vmem:[%s1195_s12] ss:$0 sm:$0xff]  ;;  %s604_s26 = sshll.u32 %s1006_s10, 4  ;;  %s605_s26 = int_to_ptr.vmem [resolvable:$true] %s604_s26 }
  0x71   :  { %s920_s29 = scalar_lea.vmem %s605_s26, 64  ;;  %p925_p13 = scmp.lt.s32.totalorder %s605_s26, %s605_s26 }
  0x72   :  { %690 = vmatpush3.bf16.msra.mxu1 %v750_v9  ;;  %p921_p12 = scmp.ne.s32.totalorder %s605_s26, %s920_s29  ;;  %p926_p0 = scmp.lt.s32.totalorder %s920_s29, %s920_s29 }
  0x73   :  { %691 = vmatprep.subr.bf16.mxu1 %v1004_v0 }
  0x74   :  { %700 = vmatmul.mubr.msk.bf16.vlgmr.msra.gmra.mxu0 %vm318_vm4, %v300_v8  ;;  %p927_p1 = por %p926_p0, %p925_p13 }
  0x75   :  { %711 = vmatprep.mubr.msk.bf16.mxu0 %vm1005_vm0, %v1004_v0  ;;  %704 = vmatpush3.bf16.msra.mxu0 %v751_v10 }
  0x76   :  { %705 = vmatprep.subr.bf16.mxu0 %v1004_v0  ;;  %692 = vmatpush3.bf16.msra.mxu1 %v752_v11  ;;  %p928_p2 = pnand %p927_p1, %p921_p12 }
  0x77   :  { %721 = vmatprep.subr.bf16.mxu1 %v1004_v0 }
  0x79   :  { %706 = vmatpush3.bf16.msra.mxu0 %v753_v12 }
  0x7a   :  { %707 = vmatprep.subr.bf16.mxu0 %v1004_v0 }
  0x7d   :  { %708 = vmatpush3.bf16.msra.mxu0 %v754_v13 }
  0x7e   :  { %709 = vmatprep.subr.bf16.mxu0 %v1004_v0 }
  0x81   :  { %710 = vmatpush3.bf16.msra.mxu0 %v755_v14 }
  0x82   :  { %715 = vmatprep.subr.bf16.mxu0 %v1004_v0 }
 0x12c   :  { %v215_v16 = vpop.f32.mrf.mxu0 }
 0x12d   :  { %v216_v17 = vadd.f32 %v634_v15, %v215_v16 }
 0x12e   :  { %v683_v18 = vpop.f32.mrf.mxu0 }
 0x12f   :  { %v221_v19 = vmax.f32 %v216_v17, 0.0 }
 0x130   :  { %v218_v20 = vpop.f32.mrf.mxu0 }
 0x131   :  { %v222_v21 = vpack.c.bf16 %v221_v19, %v221_v19 }
 0x132   :  { %v684_v22 = vpop.f32.mrf.mxu0 }
 0x133   :  { %694 = vmatmul.mubr.msk.bf16.vlgmr.msra.gmra.mxu1 %vm253_vm5, %v222_v21 }
 0x134   :  { %v360_v24 = vpop.f32.mrf.mxu0  ;;  %729 = vmatprep.mubr.msk.bf16.mxu1 %vm1005_vm0, %v1004_v0  ;;  %722 = vmatpush3.bf16.msra.mxu1 %v756_v34 }
 0x135   :  { %v361_v25 = vadd.f32 %v642_v23, %v360_v24  ;;  %723 = vmatprep.subr.bf16.mxu1 %v1004_v0 }
 0x136   :  { %v701_v26 = vpop.f32.mrf.mxu0 }
 0x137   :  { %v366_v28 = vmax.f32 %v361_v25, 0.0 }
 0x138   :  { %v363_v29 = vpop.f32.mrf.mxu0  ;;  %724 = vmatpush3.bf16.msra.mxu1 %v757_v35 }
 0x139   :  { %v367_v30 = vpack.c.bf16 %v366_v28, %v366_v28  ;;  %725 = vmatprep.subr.bf16.mxu1 %v1004_v0 }
 0x13a   :  { %v702_v32 = vpop.f32.mrf.mxu0 }
 0x13b   :  { %712 = vmatmul.mubr.msk.bf16.vlgmr.msra.gmra.mxu0 %vm253_vm5, %v367_v30 }
 0x13c   :  { %716 = vmatpush3.bf16.msra.mxu0 %v468_v31  ;;  %717 = vmatprep.mubr.msk.bf16.mxu0 %vm1005_vm0, %v1004_v0 }
 0x13d   :  { %726 = vmatpush3.bf16.msra.mxu1 %v758_v36 }
 0x13e   :  { %727 = vmatprep.subr.bf16.mxu1 %v1004_v0 }
 0x141   :  { %728 = vmatpush3.bf16.msra.mxu1 %v759_v37 }
 0x143   :  { %718 = vmatmul.mubr.msk.bf16.vlgmr.msra.gmra.mxu0 %vm462_vm7, %v444_v33 }
 0x1f3   :  { %v291_v39 = vpop.f32.mrf.mxu1 }
 0x1f4   :  { %v292_v40 = vadd.f32 %v636_v38, %v291_v39 }
 0x1f5   :  { %v695_v41 = vpop.f32.mrf.mxu1 }
 0x1f6   :  { %v297_v42 = vmax.f32 %v292_v40, 0.0 }
 0x1f7   :  { %v294_v43 = vpop.f32.mrf.mxu1 }
 0x1f8   :  { %v298_v44 = vpack.c.bf16 %v297_v42, %v297_v42 }
 0x1f9   :  { %v696_v45 = vpop.f32.mrf.mxu1 }
 0x1fa   :  { %299 = vst [vmem:[#allocation16] sm:$0xf] %v298_v44 }
 0x1fb   :  { %v435_v47 = vpop.f32.mrf.mxu0 }
 0x1fc   :  { %v436_v48 = vadd.f32 %v644_v46, %v435_v47 }
 0x1fd   :  { %v713_v49 = vpop.f32.mrf.mxu0 }
 0x1fe   :  { %v441_v50 = vmax.f32 %v436_v48, 0.0 }
 0x1ff   :  { %v438_v51 = vpop.f32.mrf.mxu0 }
 0x200   :  { %v442_v52 = vpack.c.bf16 %v441_v50, %v441_v50 }
 0x201   :  { %v714_v53 = vpop.f32.mrf.mxu0 }
 0x202   :  { %443 = vst [vmem:[#allocation17] sm:$0x7] %v442_v52 }
 0x203   :  { %v504_v55 = vpop.f32.mrf.mxu0 }
 0x204   :  { %v505_v56 = vadd.f32 %v650_v54, %v504_v55 }
 0x205   :  { %v719_v57 = vpop.f32.mrf.mxu0 }
 0x206   :  { %v510_v58 = vmax.f32 %v505_v56, 0.0 }
 0x207   :  { %v507_v59 = vpop.f32.mrf.mxu0 }
 0x208   :  { %v511_v60 = vpack.c.bf16 %v510_v58, %v510_v58 }
 0x209   :  { %v720_v61 = vpop.f32.mrf.mxu0 }
 0x20a   :  { %730 = vmatmul.mubr.msk.bf16.vlgmr.msra.gmra.mxu1 %vm253_vm5, %v511_v60 }
 0x20b   :  { %931 = shalt.err (!%p928_p2)
}
 0x20c   :  { %607 = dma.vmem_to_hbm [thread:$0]  %s605_s26, 64, %s1199_s16, [#allocation18]  }
 0x20d   :  { %s940_s4 = scalar_lea.vmem %s595_s28, 64  ;;  %p945_p4 = scmp.lt.s32.totalorder %s595_s28, %s595_s28 }
 0x20e   :  { %p941_p3 = scmp.ne.s32.totalorder %s595_s28, %s940_s4  ;;  %p946_p5 = scmp.lt.s32.totalorder %s940_s4, %s940_s4 }
 0x210   :  { %p947_p6 = por %p946_p5, %p945_p4 }
 0x212   :  { %p948_p7 = pnand %p947_p6, %p941_p3 }
 0x214   :  { %951 = shalt.err (!%p948_p7)
}
 0x215   :  { %597 = dma.vmem_to_hbm [thread:$0]  %s595_s28, 64, %s1198_s15, [#allocation4]   ;;  %v652_v62 = vld [vmem:[%s1197_s14] ss:$0 sm:$0xff] }
 0x216   :  { %s1008_s16 = smov [#allocation19]  }
 0x217   :  { %s614_s19 = sshll.u32 %s1008_s16, 4  ;;  %s615_s19 = int_to_ptr.vmem [resolvable:$true] %s614_s19 }
 0x218   :  { %s960_s5 = scalar_lea.vmem %s615_s19, 32  ;;  %p965_p9 = scmp.lt.s32.totalorder %s615_s19, %s615_s19 }
 0x219   :  { %p961_p8 = scmp.ne.s32.totalorder %s615_s19, %s960_s5  ;;  %p966_p10 = scmp.lt.s32.totalorder %s960_s5, %s960_s5 }
 0x21b   :  { %p967_p11 = por %p966_p10, %p965_p9 }
 0x21d   :  { %p968_p12 = pnand %p967_p11, %p961_p8 }
 0x2ca   :  { %v579_v63 = vpop.f32.mrf.mxu1 }
 0x2cb   :  { %v580_v0 = vadd.f32 %v652_v62, %v579_v63 }
 0x2cc   :  { %v731_v1 = vpop.f32.mrf.mxu1 }
 0x2cd   :  { %v585_v2 = vmax.f32 %v580_v0, 0.0 }
 0x2ce   :  { %v582_v3 = vpop.f32.mrf.mxu1 }
 0x2cf   :  { %v586_v4 = vpack.c.bf16 %v585_v2, %v585_v2 }
 0x2d0   :  { %v732_v5 = vpop.f32.mrf.mxu1 }
 0x2d1   :  { %587 = vst [vmem:[#allocation19] sm:$0x3] %v586_v4 }
 0x2d2   :  { %971 = shalt.err (!%p968_p12)
}
 0x2d3   :  { %617 = dma.vmem_to_hbm [thread:$0]  %s615_s19, 32, %s1200_s17, [#allocation18]  }
 0x2d4   :  { %990 = dma.done.wait [#allocation4], 64  }
 0x2d5   :  { %991 = vsyncadd [#allocation4], 4294967232 }
 0x2d6   :  { %992 = dma.done.wait [#allocation18], 96  }
 0x2d7   :  { %993 = vsyncadd [#allocation18], 4294967200 }
 0x2d8   :  { %627 = vsyncpa [#allocation3], 1 }
 0x2d9   :  { %628 = vsyncpa [#allocation6], 1 }
 0x2da   :  { %629 = vsyncpa [#allocation9], 1 }
 0x2db   :  { %630 = vsyncpa [#allocation12], 1 }
 0x2dc   :  { %631 = vsyncpa [#allocation15], 1 }
 0x2dd   :  { %632 = vsyncpa [#allocation4], 1 }
 0x2de   :  { %633 = vsyncpa [#allocation18], 1 }

</bundles_post_ra>
